<compile_context>
chip_gen: v7x
topology: tpu7x:2x2x1
jax: 0.10.0
libtpu: 0.0.40
codegen_flags: <defaults>
</compile_context>

<pallas_src>
import math
import functools

import jax
import jax.numpy as jnp
from jax.experimental import pallas as pl
from jax.experimental.pallas import tpu as pltpu


# --------------------------- fused AttentionLayer kernel ---------------------------
def _fused_attn_layer_kernel(xq_ref, xk_ref, xv_ref,
                             wq_ref, bq_ref, wk_ref, bk_ref, wv_ref, bv_ref,
                             wo_ref, bo_ref,
                             o_ref,
                             k_sc, v_sc, attn_sc,
                             *, n_heads, mix):
    H = n_heads
    mxu_dtype = wq_ref.dtype                      # bf16 after prepare_params

    # ---- K/V projections: once per batch element (lt == 0), cached in VMEM ----
    @pl.when(pl.program_id(1) == 0)
    def _():
        xk = xk_ref[...].astype(mxu_dtype)        # [S, d_model]
        xv = xv_ref[...].astype(mxu_dtype)        # [S, d_model]
        k = jnp.dot(xk, wk_ref[...], preferred_element_type=jnp.float32) + bk_ref[...]
        v = jnp.dot(xv, wv_ref[...], preferred_element_type=jnp.float32) + bv_ref[...]
        k_sc[...] = k.astype(k_sc.dtype)
        v_sc[...] = v.astype(v_sc.dtype)

    # ---- Q projection for this L-tile (1/sqrt(E) already folded into wq/bq) ----
    xq = xq_ref[...].astype(mxu_dtype)            # [TL, d_model]
    q = (jnp.dot(xq, wq_ref[...], preferred_element_type=jnp.float32)
         + bq_ref[...]).astype(mxu_dtype)         # [TL, H*E]

    k_all = k_sc[...]                             # [S, H*E] bf16 (cached)
    v_all = v_sc[...]                             # [S, H*D] bf16 (cached)

    TL = q.shape[0]
    E = q.shape[1] // H
    D = v_all.shape[1] // H

    def head_out(h):
        q_h = q[:, h * E:(h + 1) * E]             # [TL, E]
        k_h = k_all[:, h * E:(h + 1) * E]         # [S,  E]
        v_h = v_all[:, h * D:(h + 1) * D]         # [S,  D]
        # QK^T: contract last dims directly, no transposed copy of k.
        s = jax.lax.dot_general(q_h, k_h, (((1,), (1,)), ((), ())),
                                preferred_element_type=jnp.float32)   # [TL, S]
        s = s - jnp.max(s, axis=-1, keepdims=True)
        p = jnp.exp(s)                                                # f32 exp
        denom = jnp.sum(p, axis=-1, keepdims=True)                    # [TL, 1]
        o_h = jnp.dot(p.astype(mxu_dtype), v_h,
                      preferred_element_type=jnp.float32)             # [TL, D]
        # Normalize the [TL, D] output (EUP reciprocal) instead of dividing [TL, S].
        return o_h * pl.reciprocal(denom, approx=True)

    if not mix:
        # Place each head in its column window, then ONE wide (K = H*D)
        # output-projection matmul instead of H narrow K=D matmuls.
        for h in range(H):                        # H is small & static -> unrolled
            attn_sc[:, h * D:(h + 1) * D] = head_out(h)
        out2d = attn_sc[...].astype(mxu_dtype)    # [TL, H*D]
    else:
        # mix=True: out.transpose(2,1).contiguous().view(B, L, -1) is a raw
        # reinterpretation of (H, L, D) as (L, H*D). Requires a full-L tile.
        stacked = jnp.concatenate([head_out(h).astype(mxu_dtype) for h in range(H)],
                                  axis=0)         # [H*TL, D]
        out2d = stacked.reshape(TL, H * D)

    res = jnp.dot(out2d, wo_ref[...], preferred_element_type=jnp.float32) + bo_ref[...]
    o_ref[...] = res.astype(o_ref.dtype)


# ----------------------------------- wrapper -----------------------------------
def prepare_params(params, n_heads, mxu_dtype=jnp.bfloat16):
    """One-time parameter transform (outside the hot path):
       * fold the 1/sqrt(E) attention scale into wq / bq,
       * cast matmul weights to bf16 (MXU-native on v5e/v6e/v7x),
       * reshape biases to [1, n] for in-kernel broadcast (kept f32)."""
    dqk = params["wq"].shape[1]
    scale = 1.0 / math.sqrt(dqk // n_heads)
    f32 = jnp.float32
    return {
        "wq": (params["wq"].astype(f32) * scale).astype(mxu_dtype),
        "bq": (params["bq"].astype(f32) * scale).reshape(1, -1),
        "wk": params["wk"].astype(mxu_dtype),
        "bk": params["bk"].astype(f32).reshape(1, -1),
        "wv": params["wv"].astype(mxu_dtype),
        "bv": params["bv"].astype(f32).reshape(1, -1),
        "wo": params["wo"].astype(mxu_dtype),
        "bo": params["bo"].astype(f32).reshape(1, -1),
    }


def attention_layer_forward(prepared, queries, keys, values, attn_mask=None,
                            n_heads=4, mix=False, tile_l=None):
    """queries: [B, L, d_model], keys/values: [B, S, d_model] -> ([B, L, d_model], None).
    `prepared` must come from prepare_params()."""
    del attn_mask  # TODO(synk): FullAttention(mask_flag=False) — mask not applied.
    B, L, d_model = queries.shape
    _, S, _ = keys.shape
    H = n_heads

    dqk = prepared["wq"].shape[1]          # H * d_keys
    dv = prepared["wv"].shape[1]           # H * d_values
    d_out = prepared["wo"].shape[1]
    mxu_dtype = prepared["wq"].dtype

    if mix:
        # The raw (H, L, D) -> (L, H*D) reinterpretation spans the whole L axis.
        tile_l = L
    elif tile_l is None:
        # 256-row tiles pipeline well and stay far inside v7x's 32 MiB default
        # scoped VMEM (v5e/v6e can pass tile_l=512). cdiv handles ragged L:
        # padded query rows are row-independent in softmax and clipped on store.
        tile_l = L if L <= 256 else 256
    num_l = pl.cdiv(L, tile_l)

    kernel = functools.partial(_fused_attn_layer_kernel, n_heads=H, mix=mix)

    out = pl.pallas_call(
        kernel,
        out_shape=jax.ShapeDtypeStruct((B, L, d_out), queries.dtype),
        grid=(B, num_l),
        in_specs=[
            # activations (batch dim squeezed away)
            pl.BlockSpec((None, tile_l, d_model), lambda b, lt: (b, lt, 0)),  # queries tile
            pl.BlockSpec((None, S, d_model), lambda b, lt: (b, 0, 0)),        # keys (per-batch, reused over lt)
            pl.BlockSpec((None, S, d_model), lambda b, lt: (b, 0, 0)),        # values
            # weights / biases: constant index_map -> resident in VMEM across the grid
            pl.BlockSpec((d_model, dqk), lambda b, lt: (0, 0)),               # wq (bf16)
            pl.BlockSpec((1, dqk), lambda b, lt: (0, 0)),                     # bq (f32)
            pl.BlockSpec((d_model, dqk), lambda b, lt: (0, 0)),               # wk
            pl.BlockSpec((1, dqk), lambda b, lt: (0, 0)),                     # bk
            pl.BlockSpec((d_model, dv), lambda b, lt: (0, 0)),                # wv
            pl.BlockSpec((1, dv), lambda b, lt: (0, 0)),                      # bv
            pl.BlockSpec((dv, d_out), lambda b, lt: (0, 0)),                  # wo
            pl.BlockSpec((1, d_out), lambda b, lt: (0, 0)),                   # bo
        ],
        out_specs=pl.BlockSpec((None, tile_l, d_out), lambda b, lt: (b, lt, 0)),
        scratch_shapes=[
            pltpu.VMEM((S, dqk), mxu_dtype),        # cached K projection (per batch element)
            pltpu.VMEM((S, dv), mxu_dtype),         # cached V projection (per batch element)
            pltpu.VMEM((tile_l, dv), jnp.float32),  # per-tile head-concat buffer
        ],
        compiler_params=pltpu.CompilerParams(
            # batch is megacore-shardable; lt must be "arbitrary" so the per-batch
            # K/V scratch cache (filled at lt == 0) stays on the core that uses it.
            dimension_semantics=("parallel", "arbitrary"),
        ),
    )(queries, keys, values,
      prepared["wq"], prepared["bq"], prepared["wk"], prepared["bk"],
      prepared["wv"], prepared["bv"], prepared["wo"], prepared["bo"])

    return out, None  # attn is None (output_attention=False)


# ------------------------------ params / reference ------------------------------
def init_params(key, d_model, n_heads):
    d_keys = d_model // n_heads
    d_values = d_model // n_heads
    ks = jax.random.split(key, 8)
    scale = 1.0 / math.sqrt(d_model)
    # Weights stored pre-transposed: [in_features, out_features].
    return {
        "wq": (jax.random.normal(ks[0], (d_model, d_keys * n_heads)) * scale).astype(jnp.float32),
        "bq": (jax.random.normal(ks[1], (d_keys * n_heads,)) * scale).astype(jnp.float32),
        "wk": (jax.random.normal(ks[2], (d_model, d_keys * n_heads)) * scale).astype(jnp.float32),
        "bk": (jax.random.normal(ks[3], (d_keys * n_heads,)) * scale).astype(jnp.float32),
        "wv": (jax.random.normal(ks[4], (d_model, d_values * n_heads)) * scale).astype(jnp.float32),
        "bv": (jax.random.normal(ks[5], (d_values * n_heads,)) * scale).astype(jnp.float32),
        "wo": (jax.random.normal(ks[6], (d_values * n_heads, d_model)) * scale).astype(jnp.float32),
        "bo": (jax.random.normal(ks[7], (d_model,)) * scale).astype(jnp.float32),
    }


def _reference_forward(params, queries, keys, values, n_heads):
    """Pure-JAX f32 reference of AttentionLayer(FullAttention(mask_flag=False)), mix=False."""
    B, L, _ = queries.shape
    _, S, _ = keys.shape
    H = n_heads
    q = queries @ params["wq"] + params["bq"]
    k = keys @ params["wk"] + params["bk"]
    v = values @ params["wv"] + params["bv"]
    E = q.shape[-1] // H
    D = v.shape[-1] // H
    q = q.reshape(B, L, H, E)
    k = k.reshape(B, S, H, E)
    v = v.reshape(B, S, H, D)
    scores = jnp.einsum("blhe,bshe->bhls", q, k) / math.sqrt(E)
    a = jax.nn.softmax(scores, axis=-1)
    o = jnp.einsum("bhls,bshd->blhd", a, v).reshape(B, L, H * D)
    return o @ params["wo"] + params["bo"]


if __name__ == "__main__":
    B, L, S, d_model, n_heads = 2, 8, 8, 32, 4

    key = jax.random.PRNGKey(0)
    kp, kq, kk, kv = jax.random.split(key, 4)

    params = init_params(kp, d_model, n_heads)
    queries = jax.random.normal(kq, (B, L, d_model), dtype=jnp.float32)
    keys = jax.random.normal(kk, (B, S, d_model), dtype=jnp.float32)
    values = jax.random.normal(kv, (B, S, d_model), dtype=jnp.float32)

    prepared = prepare_params(params, n_heads)   # one-time transform, outside hot path
    out, attn = attention_layer_forward(prepared, queries, keys, values,
                                        attn_mask=None, n_heads=n_heads, mix=False)
    jax.block_until_ready(out)
    assert out.shape == (B, L, d_model)

    # Loose-tolerance check vs pure-f32 reference (bf16 MXU operands + approximate
    # reciprocal introduce a small, benign numerical deviation).
    ref = _reference_forward(params, queries, keys, values, n_heads)
    max_err = float(jnp.max(jnp.abs(out - ref)))
    assert max_err < 1e-1, f"max abs error {max_err}"
    print("KERNEL_OK")
</pallas_src>

<mosaic_0001>
module attributes {stable_mosaic.version = 11 : i64} {
  func.func @_fused_attn_layer_kernel(%arg0: i32, %arg1: i32, %arg2: memref<1x8x32xf32, #tpu.memory_space<vmem>>, %arg3: memref<1x8x32xf32, #tpu.memory_space<vmem>>, %arg4: memref<1x8x32xf32, #tpu.memory_space<vmem>>, %arg5: memref<32x32xbf16, #tpu.memory_space<vmem>>, %arg6: memref<1x32xf32, #tpu.memory_space<vmem>>, %arg7: memref<32x32xbf16, #tpu.memory_space<vmem>>, %arg8: memref<1x32xf32, #tpu.memory_space<vmem>>, %arg9: memref<32x32xbf16, #tpu.memory_space<vmem>>, %arg10: memref<1x32xf32, #tpu.memory_space<vmem>>, %arg11: memref<32x32xbf16, #tpu.memory_space<vmem>>, %arg12: memref<1x32xf32, #tpu.memory_space<vmem>>, %arg13: memref<1x8x32xf32, #tpu.memory_space<vmem>>, %arg14: memref<8x32xbf16, #tpu.memory_space<vmem>>, %arg15: memref<8x32xbf16, #tpu.memory_space<vmem>>, %arg16: memref<8x32xf32, #tpu.memory_space<vmem>>) attributes {dimension_semantics = [#tpu.dimension_semantics<parallel>, #tpu.dimension_semantics<arbitrary>], iteration_bounds = array<i64: 2, 1>, scalar_prefetch = 0 : i64, scratch_operands = 3 : i64, tpu.core_type = #tpu.core_type<tc>, window_params = [{transform_indices = @transform_0, window_bounds = array<i64: 1, 8, 32>}, {transform_indices = @transform_1, window_bounds = array<i64: 1, 8, 32>}, {transform_indices = @transform_2, window_bounds = array<i64: 1, 8, 32>}, {pipeline_mode = #tpu.pipeline_mode<synchronous>, transform_indices = @transform_3, window_bounds = array<i64: 32, 32>}, {pipeline_mode = #tpu.pipeline_mode<synchronous>, transform_indices = @transform_4, window_bounds = array<i64: 1, 32>}, {pipeline_mode = #tpu.pipeline_mode<synchronous>, transform_indices = @transform_5, window_bounds = array<i64: 32, 32>}, {pipeline_mode = #tpu.pipeline_mode<synchronous>, transform_indices = @transform_6, window_bounds = array<i64: 1, 32>}, {pipeline_mode = #tpu.pipeline_mode<synchronous>, transform_indices = @transform_7, window_bounds = array<i64: 32, 32>}, {pipeline_mode = #tpu.pipeline_mode<synchronous>, transform_indices = @transform_8, window_bounds = array<i64: 1, 32>}, {pipeline_mode = #tpu.pipeline_mode<synchronous>, transform_indices = @transform_9, window_bounds = array<i64: 32, 32>}, {pipeline_mode = #tpu.pipeline_mode<synchronous>, transform_indices = @transform_10, window_bounds = array<i64: 1, 32>}, {transform_indices = @transform_11, window_bounds = array<i64: 1, 8, 32>}]} {
    %c0_i32 = arith.constant 0 : i32
    %0 = arith.cmpi eq, %arg1, %c0_i32 : i32
    %1 = arith.extui %0 : i1 to i32
    %c0_i32_0 = arith.constant 0 : i32
    %2 = arith.cmpi ne, %1, %c0_i32_0 : i32
    scf.if %2 {
      %c0_42 = arith.constant 0 : index
      %c0_43 = arith.constant 0 : index
      %c0_44 = arith.constant 0 : index
      %92 = vector.load %arg3[%c0_42, %c0_43, %c0_44] : memref<1x8x32xf32, #tpu.memory_space<vmem>>, vector<1x8x32xf32>
      %93 = vector.shape_cast %92 : vector<1x8x32xf32> to vector<8x32xf32>
      %94 = arith.truncf %93 : vector<8x32xf32> to vector<8x32xbf16>
      %c0_45 = arith.constant 0 : index
      %c0_46 = arith.constant 0 : index
      %c0_47 = arith.constant 0 : index
      %95 = vector.load %arg4[%c0_45, %c0_46, %c0_47] : memref<1x8x32xf32, #tpu.memory_space<vmem>>, vector<1x8x32xf32>
      %96 = vector.shape_cast %95 : vector<1x8x32xf32> to vector<8x32xf32>
      %97 = arith.truncf %96 : vector<8x32xf32> to vector<8x32xbf16>
      %c0_48 = arith.constant 0 : index
      %c0_49 = arith.constant 0 : index
      %98 = vector.load %arg7[%c0_48, %c0_49] : memref<32x32xbf16, #tpu.memory_space<vmem>>, vector<32x32xbf16>
      %cst_50 = arith.constant dense<0.000000e+00> : vector<8x32xf32>
      %99 = tpu.matmul %94, %98, %cst_50 {dimension_numbers = #tpu.dot_dimension_numbers<[1], [0], [0], [1], [0, 0, 1, 1], [], []>} : vector<8x32xbf16>, vector<32x32xbf16>, vector<8x32xf32> -> vector<8x32xf32>
      %c0_51 = arith.constant 0 : index
      %c0_52 = arith.constant 0 : index
      %100 = vector.load %arg8[%c0_51, %c0_52] : memref<1x32xf32, #tpu.memory_space<vmem>>, vector<1x32xf32>
      %101 = vector.broadcast %100 : vector<1x32xf32> to vector<8x32xf32>
      %102 = arith.addf %99, %101 : vector<8x32xf32>
      %c0_53 = arith.constant 0 : index
      %c0_54 = arith.constant 0 : index
      %103 = vector.load %arg9[%c0_53, %c0_54] : memref<32x32xbf16, #tpu.memory_space<vmem>>, vector<32x32xbf16>
      %cst_55 = arith.constant dense<0.000000e+00> : vector<8x32xf32>
      %104 = tpu.matmul %97, %103, %cst_55 {dimension_numbers = #tpu.dot_dimension_numbers<[1], [0], [0], [1], [0, 0, 1, 1], [], []>} : vector<8x32xbf16>, vector<32x32xbf16>, vector<8x32xf32> -> vector<8x32xf32>
      %c0_56 = arith.constant 0 : index
      %c0_57 = arith.constant 0 : index
      %105 = vector.load %arg10[%c0_56, %c0_57] : memref<1x32xf32, #tpu.memory_space<vmem>>, vector<1x32xf32>
      %106 = vector.broadcast %105 : vector<1x32xf32> to vector<8x32xf32>
      %107 = arith.addf %104, %106 : vector<8x32xf32>
      %108 = arith.truncf %102 : vector<8x32xf32> to vector<8x32xbf16>
      %c0_58 = arith.constant 0 : index
      %c0_59 = arith.constant 0 : index
      %109 = vector.load %arg14[%c0_58, %c0_59] : memref<8x32xbf16, #tpu.memory_space<vmem>>, vector<8x32xbf16>
      tpu.vector_store %arg14[%c0_58, %c0_59], %108 {strides = array<i32>} : memref<8x32xbf16, #tpu.memory_space<vmem>>, vector<8x32xbf16>,
      %110 = arith.truncf %107 : vector<8x32xf32> to vector<8x32xbf16>
      %c0_60 = arith.constant 0 : index
      %c0_61 = arith.constant 0 : index
      %111 = vector.load %arg15[%c0_60, %c0_61] : memref<8x32xbf16, #tpu.memory_space<vmem>>, vector<8x32xbf16>
      tpu.vector_store %arg15[%c0_60, %c0_61], %110 {strides = array<i32>} : memref<8x32xbf16, #tpu.memory_space<vmem>>, vector<8x32xbf16>,
    } else {
    }
    %c0 = arith.constant 0 : index
    %c0_1 = arith.constant 0 : index
    %c0_2 = arith.constant 0 : index
    %3 = vector.load %arg2[%c0, %c0_1, %c0_2] : memref<1x8x32xf32, #tpu.memory_space<vmem>>, vector<1x8x32xf32>
    %4 = vector.shape_cast %3 : vector<1x8x32xf32> to vector<8x32xf32>
    %5 = arith.truncf %4 : vector<8x32xf32> to vector<8x32xbf16>
    %c0_3 = arith.constant 0 : index
    %c0_4 = arith.constant 0 : index
    %6 = vector.load %arg5[%c0_3, %c0_4] : memref<32x32xbf16, #tpu.memory_space<vmem>>, vector<32x32xbf16>
    %cst = arith.constant dense<0.000000e+00> : vector<8x32xf32>
    %7 = tpu.matmul %5, %6, %cst {dimension_numbers = #tpu.dot_dimension_numbers<[1], [0], [0], [1], [0, 0, 1, 1], [], []>} : vector<8x32xbf16>, vector<32x32xbf16>, vector<8x32xf32> -> vector<8x32xf32>
    %c0_5 = arith.constant 0 : index
    %c0_6 = arith.constant 0 : index
    %8 = vector.load %arg6[%c0_5, %c0_6] : memref<1x32xf32, #tpu.memory_space<vmem>>, vector<1x32xf32>
    %9 = vector.broadcast %8 : vector<1x32xf32> to vector<8x32xf32>
    %10 = arith.addf %7, %9 : vector<8x32xf32>
    %11 = arith.truncf %10 : vector<8x32xf32> to vector<8x32xbf16>
    %c0_7 = arith.constant 0 : index
    %c0_8 = arith.constant 0 : index
    %12 = vector.load %arg14[%c0_7, %c0_8] : memref<8x32xbf16, #tpu.memory_space<vmem>>, vector<8x32xbf16>
    %c0_9 = arith.constant 0 : index
    %c0_10 = arith.constant 0 : index
    %13 = vector.load %arg15[%c0_9, %c0_10] : memref<8x32xbf16, #tpu.memory_space<vmem>>, vector<8x32xbf16>
    %14 = vector.extract_strided_slice %11 {offsets = [0, 0], sizes = [8, 8], strides = [1, 1]} : vector<8x32xbf16> to vector<8x8xbf16>
    %15 = vector.extract_strided_slice %12 {offsets = [0, 0], sizes = [8, 8], strides = [1, 1]} : vector<8x32xbf16> to vector<8x8xbf16>
    %16 = vector.extract_strided_slice %13 {offsets = [0, 0], sizes = [8, 8], strides = [1, 1]} : vector<8x32xbf16> to vector<8x8xbf16>
    %cst_11 = arith.constant dense<0.000000e+00> : vector<8x8xf32>
    %17 = tpu.matmul %14, %15, %cst_11 {dimension_numbers = #tpu.dot_dimension_numbers<[1], [1], [0], [0], [0, 0, 1, 0], [], []>} : vector<8x8xbf16>, vector<8x8xbf16>, vector<8x8xf32> -> vector<8x8xf32>
    %cst_12 = arith.constant dense<0xFF800000> : vector<8xf32>
    %18 = vector.multi_reduction <maximumf>, %17, %cst_12 [1] : vector<8x8xf32> to vector<8xf32>
    %19 = vector.shape_cast %18 : vector<8xf32> to vector<8x1xf32>
    %20 = vector.broadcast %19 : vector<8x1xf32> to vector<8x8xf32>
    %21 = arith.subf %17, %20 : vector<8x8xf32>
    %22 = math.exp %21 : vector<8x8xf32>
    %cst_13 = arith.constant dense<0.000000e+00> : vector<8xf32>
    %23 = vector.multi_reduction <add>, %22, %cst_13 [1] : vector<8x8xf32> to vector<8xf32>
    %24 = vector.shape_cast %23 : vector<8xf32> to vector<8x1xf32>
    %25 = arith.truncf %22 : vector<8x8xf32> to vector<8x8xbf16>
    %cst_14 = arith.constant dense<0.000000e+00> : vector<8x8xf32>
    %26 = tpu.matmul %25, %16, %cst_14 {dimension_numbers = #tpu.dot_dimension_numbers<[1], [0], [0], [1], [0, 0, 1, 1], [], []>} : vector<8x8xbf16>, vector<8x8xbf16>, vector<8x8xf32> -> vector<8x8xf32>
    %27 = tpu.reciprocal %24 {approx = true} : vector<8x1xf32> -> vector<8x1xf32>
    %28 = vector.broadcast %27 : vector<8x1xf32> to vector<8x8xf32>
    %29 = arith.mulf %26, %28 : vector<8x8xf32>
    %c0_15 = arith.constant 0 : index
    %c0_16 = arith.constant 0 : index
    %30 = vector.load %arg16[%c0_15, %c0_16] : memref<8x32xf32, #tpu.memory_space<vmem>>, vector<8x8xf32>
    tpu.vector_store %arg16[%c0_15, %c0_16], %29 {strides = array<i32>} : memref<8x32xf32, #tpu.memory_space<vmem>>, vector<8x8xf32>,
    %31 = vector.extract_strided_slice %11 {offsets = [0, 8], sizes = [8, 8], strides = [1, 1]} : vector<8x32xbf16> to vector<8x8xbf16>
    %32 = vector.extract_strided_slice %12 {offsets = [0, 8], sizes = [8, 8], strides = [1, 1]} : vector<8x32xbf16> to vector<8x8xbf16>
    %33 = vector.extract_strided_slice %13 {offsets = [0, 8], sizes = [8, 8], strides = [1, 1]} : vector<8x32xbf16> to vector<8x8xbf16>
    %cst_17 = arith.constant dense<0.000000e+00> : vector<8x8xf32>
    %34 = tpu.matmul %31, %32, %cst_17 {dimension_numbers = #tpu.dot_dimension_numbers<[1], [1], [0], [0], [0, 0, 1, 0], [], []>} : vector<8x8xbf16>, vector<8x8xbf16>, vector<8x8xf32> -> vector<8x8xf32>
    %cst_18 = arith.constant dense<0xFF800000> : vector<8xf32>
    %35 = vector.multi_reduction <maximumf>, %34, %cst_18 [1] : vector<8x8xf32> to vector<8xf32>
    %36 = vector.shape_cast %35 : vector<8xf32> to vector<8x1xf32>
    %37 = vector.broadcast %36 : vector<8x1xf32> to vector<8x8xf32>
    %38 = arith.subf %34, %37 : vector<8x8xf32>
    %39 = math.exp %38 : vector<8x8xf32>
    %cst_19 = arith.constant dense<0.000000e+00> : vector<8xf32>
    %40 = vector.multi_reduction <add>, %39, %cst_19 [1] : vector<8x8xf32> to vector<8xf32>
    %41 = vector.shape_cast %40 : vector<8xf32> to vector<8x1xf32>
    %42 = arith.truncf %39 : vector<8x8xf32> to vector<8x8xbf16>
    %cst_20 = arith.constant dense<0.000000e+00> : vector<8x8xf32>
    %43 = tpu.matmul %42, %33, %cst_20 {dimension_numbers = #tpu.dot_dimension_numbers<[1], [0], [0], [1], [0, 0, 1, 1], [], []>} : vector<8x8xbf16>, vector<8x8xbf16>, vector<8x8xf32> -> vector<8x8xf32>
    %44 = tpu.reciprocal %41 {approx = true} : vector<8x1xf32> -> vector<8x1xf32>
    %45 = vector.broadcast %44 : vector<8x1xf32> to vector<8x8xf32>
    %46 = arith.mulf %43, %45 : vector<8x8xf32>
    %c0_21 = arith.constant 0 : index
    %c8 = arith.constant 8 : index
    %47 = vector.load %arg16[%c0_21, %c8] : memref<8x32xf32, #tpu.memory_space<vmem>>, vector<8x8xf32>
    tpu.vector_store %arg16[%c0_21, %c8], %46 {strides = array<i32>} : memref<8x32xf32, #tpu.memory_space<vmem>>, vector<8x8xf32>,
    %48 = vector.extract_strided_slice %11 {offsets = [0, 16], sizes = [8, 8], strides = [1, 1]} : vector<8x32xbf16> to vector<8x8xbf16>
    %49 = vector.extract_strided_slice %12 {offsets = [0, 16], sizes = [8, 8], strides = [1, 1]} : vector<8x32xbf16> to vector<8x8xbf16>
    %50 = vector.extract_strided_slice %13 {offsets = [0, 16], sizes = [8, 8], strides = [1, 1]} : vector<8x32xbf16> to vector<8x8xbf16>
    %cst_22 = arith.constant dense<0.000000e+00> : vector<8x8xf32>
    %51 = tpu.matmul %48, %49, %cst_22 {dimension_numbers = #tpu.dot_dimension_numbers<[1], [1], [0], [0], [0, 0, 1, 0], [], []>} : vector<8x8xbf16>, vector<8x8xbf16>, vector<8x8xf32> -> vector<8x8xf32>
    %cst_23 = arith.constant dense<0xFF800000> : vector<8xf32>
    %52 = vector.multi_reduction <maximumf>, %51, %cst_23 [1] : vector<8x8xf32> to vector<8xf32>
    %53 = vector.shape_cast %52 : vector<8xf32> to vector<8x1xf32>
    %54 = vector.broadcast %53 : vector<8x1xf32> to vector<8x8xf32>
    %55 = arith.subf %51, %54 : vector<8x8xf32>
    %56 = math.exp %55 : vector<8x8xf32>
    %cst_24 = arith.constant dense<0.000000e+00> : vector<8xf32>
    %57 = vector.multi_reduction <add>, %56, %cst_24 [1] : vector<8x8xf32> to vector<8xf32>
    %58 = vector.shape_cast %57 : vector<8xf32> to vector<8x1xf32>
    %59 = arith.truncf %56 : vector<8x8xf32> to vector<8x8xbf16>
    %cst_25 = arith.constant dense<0.000000e+00> : vector<8x8xf32>
    %60 = tpu.matmul %59, %50, %cst_25 {dimension_numbers = #tpu.dot_dimension_numbers<[1], [0], [0], [1], [0, 0, 1, 1], [], []>} : vector<8x8xbf16>, vector<8x8xbf16>, vector<8x8xf32> -> vector<8x8xf32>
    %61 = tpu.reciprocal %58 {approx = true} : vector<8x1xf32> -> vector<8x1xf32>
    %62 = vector.broadcast %61 : vector<8x1xf32> to vector<8x8xf32>
    %63 = arith.mulf %60, %62 : vector<8x8xf32>
    %c0_26 = arith.constant 0 : index
    %c16 = arith.constant 16 : index
    %64 = vector.load %arg16[%c0_26, %c16] : memref<8x32xf32, #tpu.memory_space<vmem>>, vector<8x8xf32>
    tpu.vector_store %arg16[%c0_26, %c16], %63 {strides = array<i32>} : memref<8x32xf32, #tpu.memory_space<vmem>>, vector<8x8xf32>,
    %65 = vector.extract_strided_slice %11 {offsets = [0, 24], sizes = [8, 8], strides = [1, 1]} : vector<8x32xbf16> to vector<8x8xbf16>
    %66 = vector.extract_strided_slice %12 {offsets = [0, 24], sizes = [8, 8], strides = [1, 1]} : vector<8x32xbf16> to vector<8x8xbf16>
    %67 = vector.extract_strided_slice %13 {offsets = [0, 24], sizes = [8, 8], strides = [1, 1]} : vector<8x32xbf16> to vector<8x8xbf16>
    %cst_27 = arith.constant dense<0.000000e+00> : vector<8x8xf32>
    %68 = tpu.matmul %65, %66, %cst_27 {dimension_numbers = #tpu.dot_dimension_numbers<[1], [1], [0], [0], [0, 0, 1, 0], [], []>} : vector<8x8xbf16>, vector<8x8xbf16>, vector<8x8xf32> -> vector<8x8xf32>
    %cst_28 = arith.constant dense<0xFF800000> : vector<8xf32>
    %69 = vector.multi_reduction <maximumf>, %68, %cst_28 [1] : vector<8x8xf32> to vector<8xf32>
    %70 = vector.shape_cast %69 : vector<8xf32> to vector<8x1xf32>
    %71 = vector.broadcast %70 : vector<8x1xf32> to vector<8x8xf32>
    %72 = arith.subf %68, %71 : vector<8x8xf32>
    %73 = math.exp %72 : vector<8x8xf32>
    %cst_29 = arith.constant dense<0.000000e+00> : vector<8xf32>
    %74 = vector.multi_reduction <add>, %73, %cst_29 [1] : vector<8x8xf32> to vector<8xf32>
    %75 = vector.shape_cast %74 : vector<8xf32> to vector<8x1xf32>
    %76 = arith.truncf %73 : vector<8x8xf32> to vector<8x8xbf16>
    %cst_30 = arith.constant dense<0.000000e+00> : vector<8x8xf32>
    %77 = tpu.matmul %76, %67, %cst_30 {dimension_numbers = #tpu.dot_dimension_numbers<[1], [0], [0], [1], [0, 0, 1, 1], [], []>} : vector<8x8xbf16>, vector<8x8xbf16>, vector<8x8xf32> -> vector<8x8xf32>
    %78 = tpu.reciprocal %75 {approx = true} : vector<8x1xf32> -> vector<8x1xf32>
    %79 = vector.broadcast %78 : vector<8x1xf32> to vector<8x8xf32>
    %80 = arith.mulf %77, %79 : vector<8x8xf32>
    %c0_31 = arith.constant 0 : index
    %c24 = arith.constant 24 : index
    %81 = vector.load %arg16[%c0_31, %c24] : memref<8x32xf32, #tpu.memory_space<vmem>>, vector<8x8xf32>
    tpu.vector_store %arg16[%c0_31, %c24], %80 {strides = array<i32>} : memref<8x32xf32, #tpu.memory_space<vmem>>, vector<8x8xf32>,
    %c0_32 = arith.constant 0 : index
    %c0_33 = arith.constant 0 : index
    %82 = vector.load %arg16[%c0_32, %c0_33] : memref<8x32xf32, #tpu.memory_space<vmem>>, vector<8x32xf32>
    %83 = arith.truncf %82 : vector<8x32xf32> to vector<8x32xbf16>
    %c0_34 = arith.constant 0 : index
    %c0_35 = arith.constant 0 : index
    %84 = vector.load %arg11[%c0_34, %c0_35] : memref<32x32xbf16, #tpu.memory_space<vmem>>, vector<32x32xbf16>
    %cst_36 = arith.constant dense<0.000000e+00> : vector<8x32xf32>
    %85 = tpu.matmul %83, %84, %cst_36 {dimension_numbers = #tpu.dot_dimension_numbers<[1], [0], [0], [1], [0, 0, 1, 1], [], []>} : vector<8x32xbf16>, vector<32x32xbf16>, vector<8x32xf32> -> vector<8x32xf32>
    %c0_37 = arith.constant 0 : index
    %c0_38 = arith.constant 0 : index
    %86 = vector.load %arg12[%c0_37, %c0_38] : memref<1x32xf32, #tpu.memory_space<vmem>>, vector<1x32xf32>
    %87 = vector.broadcast %86 : vector<1x32xf32> to vector<8x32xf32>
    %88 = arith.addf %85, %87 : vector<8x32xf32>
    %c0_39 = arith.constant 0 : index
    %c0_40 = arith.constant 0 : index
    %c0_41 = arith.constant 0 : index
    %89 = vector.load %arg13[%c0_39, %c0_40, %c0_41] : memref<1x8x32xf32, #tpu.memory_space<vmem>>, vector<1x8x32xf32>
    %90 = vector.shape_cast %89 : vector<1x8x32xf32> to vector<8x32xf32>
    %91 = vector.shape_cast %88 : vector<8x32xf32> to vector<1x8x32xf32>
    tpu.vector_store %arg13[%c0_39, %c0_40, %c0_41], %91 {strides = array<i32>} : memref<1x8x32xf32, #tpu.memory_space<vmem>>, vector<1x8x32xf32>,
    return
  }
  func.func @transform_0(%arg0: i32, %arg1: i32) -> (i32, i32, i32) {
    %c0_i32 = arith.constant 0 : i32
    %c0_i32_0 = arith.constant 0 : i32
    return %arg0, %arg1, %c0_i32 : i32, i32, i32
  }
  func.func @transform_1(%arg0: i32, %arg1: i32) -> (i32, i32, i32) {
    %c0_i32 = arith.constant 0 : i32
    %c0_i32_0 = arith.constant 0 : i32
    %c0_i32_1 = arith.constant 0 : i32
    return %arg0, %c0_i32, %c0_i32_0 : i32, i32, i32
  }
  func.func @transform_2(%arg0: i32, %arg1: i32) -> (i32, i32, i32) {
    %c0_i32 = arith.constant 0 : i32
    %c0_i32_0 = arith.constant 0 : i32
    %c0_i32_1 = arith.constant 0 : i32
    return %arg0, %c0_i32, %c0_i32_0 : i32, i32, i32
  }
  func.func @transform_3(%arg0: i32, %arg1: i32) -> (i32, i32) {
    %c0_i32 = arith.constant 0 : i32
    %c0_i32_0 = arith.constant 0 : i32
    %c0_i32_1 = arith.constant 0 : i32
    return %c0_i32, %c0_i32_0 : i32, i32
  }
  func.func @transform_4(%arg0: i32, %arg1: i32) -> (i32, i32) {
    %c0_i32 = arith.constant 0 : i32
    %c0_i32_0 = arith.constant 0 : i32
    %c0_i32_1 = arith.constant 0 : i32
    return %c0_i32, %c0_i32_0 : i32, i32
  }
  func.func @transform_5(%arg0: i32, %arg1: i32) -> (i32, i32) {
    %c0_i32 = arith.constant 0 : i32
    %c0_i32_0 = arith.constant 0 : i32
    %c0_i32_1 = arith.constant 0 : i32
    return %c0_i32, %c0_i32_0 : i32, i32
  }
  func.func @transform_6(%arg0: i32, %arg1: i32) -> (i32, i32) {
    %c0_i32 = arith.constant 0 : i32
    %c0_i32_0 = arith.constant 0 : i32
    %c0_i32_1 = arith.constant 0 : i32
    return %c0_i32, %c0_i32_0 : i32, i32
  }
  func.func @transform_7(%arg0: i32, %arg1: i32) -> (i32, i32) {
    %c0_i32 = arith.constant 0 : i32
    %c0_i32_0 = arith.constant 0 : i32
    %c0_i32_1 = arith.constant 0 : i32
    return %c0_i32, %c0_i32_0 : i32, i32
  }
  func.func @transform_8(%arg0: i32, %arg1: i32) -> (i32, i32) {
    %c0_i32 = arith.constant 0 : i32
    %c0_i32_0 = arith.constant 0 : i32
    %c0_i32_1 = arith.constant 0 : i32
    return %c0_i32, %c0_i32_0 : i32, i32
  }
  func.func @transform_9(%arg0: i32, %arg1: i32) -> (i32, i32) {
    %c0_i32 = arith.constant 0 : i32
    %c0_i32_0 = arith.constant 0 : i32
    %c0_i32_1 = arith.constant 0 : i32
    return %c0_i32, %c0_i32_0 : i32, i32
  }
  func.func @transform_10(%arg0: i32, %arg1: i32) -> (i32, i32) {
    %c0_i32 = arith.constant 0 : i32
    %c0_i32_0 = arith.constant 0 : i32
    %c0_i32_1 = arith.constant 0 : i32
    return %c0_i32, %c0_i32_0 : i32, i32
  }
  func.func @transform_11(%arg0: i32, %arg1: i32) -> (i32, i32, i32) {
    %c0_i32 = arith.constant 0 : i32
    %c0_i32_0 = arith.constant 0 : i32
    return %arg0, %arg1, %c0_i32 : i32, i32, i32
  }
}

</mosaic_0001>

<bundles_post_ra>
// kernel: tpu_custom_call.1
= control target key start
LH: loop header
LB: loop body
LE: loop exit
PB: predicated region body
PF: predicated region fallthrough
CT: control target
= control target key end

     0   :  { %s2537_s0 = inlined_call_operand.hbm [shape: f32[2,8,32], index: 0, kind: input, shape index: {}]   ;;  %s2538_s1 = inlined_call_operand.hbm [shape: f32[2,8,32], index: 1, kind: input, shape index: {}]   ;;  %s2539_s2 = inlined_call_operand.hbm [shape: f32[2,8,32], index: 2, kind: input, shape index: {}]   ;;  %s2540_s3 = inlined_call_operand.hbm [shape: bf16[32,32], index: 3, kind: input, shape index: {}]   ;;  %s2541_s4 = inlined_call_operand.vmem [shape: f32[1,32], index: 4, kind: input, shape index: {}]   ;;  %s2542_s5 = inlined_call_operand.vmem [shape: bf16[32,32], index: 5, kind: input, shape index: {}]   ;;  %s2543_s6 = inlined_call_operand.vmem [shape: f32[1,32], index: 6, kind: input, shape index: {}]   ;;  %s2544_s7 = inlined_call_operand.hbm [shape: bf16[32,32], index: 7, kind: input, shape index: {}]   ;;  %s2545_s8 = inlined_call_operand.hbm [shape: f32[1,32], index: 8, kind: input, shape index: {}]   ;;  %s2546_s9 = inlined_call_operand.vmem [shape: bf16[32,32], index: 9, kind: input, shape index: {}]   ;;  %s2547_s10 = inlined_call_operand.vmem [shape: f32[1,32], index: 10, kind: input, shape index: {}]   ;;  %s2548_s11 = inlined_call_operand.hbm [shape: f32[2,8,32], index: 11, kind: output, shape index: {}]  }
   0x1   :  { %2574 = sst [smem:[#allocation30_spill]] %s2538_s1 }
   0x2   :  { %2575 = sst [smem:[#allocation31_spill]] %s2540_s3 }
   0x3   :  { %2576 = sst [smem:[#allocation32_spill]] %s2541_s4 }
   0x4   :  { %2577 = sst [smem:[#allocation33_spill]] %s2543_s6 }
   0x5   :  { %2578 = sst [smem:[#allocation34_spill]] %s2546_s9 }
   0x6   :  { %2579 = sst [smem:[#allocation35_spill]] %s2547_s10 }
   0x7   :  { %2580 = sst [smem:[#allocation36_spill]] %s2548_s11 }
   0x8   :  { %16 = vsyncpa [#allocation6], 0 }
   0x9   :  { %18 = vsyncpa [#allocation6 + $0x1], 0 }
   0xa   :  { %19 = vsyncpa [#allocation9], 0 }
   0xb   :  { %21 = vsyncpa [#allocation9 + $0x1], 0 }
   0xc   :  { %22 = vsyncpa [#allocation12], 0 }
   0xd   :  { %23 = vsyncpa [#allocation15], 0 }
   0xe   :  { %24 = vsyncpa [#allocation7], 0 }
   0xf   :  { %26 = vsyncpa [#allocation7 + $0x1], 0  ;;  %s2094_s17 = smov 0   ;;  %s2096_s18 = smov 0  }
  0x10   :  { %s2098_s19 = smov 0   ;;  %s2100_s20 = smov 0  }
  0x11   :  { %s2102_s21 = smov 0   ;;  %s2104_s22 = smov 0  }
  0x12 LB: > { %2581 = sst [smem:[#allocation22_spill]] %s1995_s17  ;;  %s2125_s23 = sadd.s32 4294967295, %s2015_s22   ;;  %s2015_s22 = sphi %s2104_s22, %s32_s22   ;;  %s2011_s21 = sphi %s2102_s21, %s2630_s21   ;;  %s2007_s20 = sphi %s2100_s20, %s2629_s20   ;;  %s2003_s19 = sphi %s2098_s19, %s2633_s19   ;;  %s1999_s18 = sphi %s2096_s18, %s2632_s18   ;;  %s1995_s17 = sphi %s2094_s17, %s2631_s17  }
  0x13   : > { %2582 = sst [smem:[#allocation23_spill]] %s2007_s20  ;;  %s1450_s24 = sadd.s32 4294967294, %s2015_s22  }
  0x14   : > { %2583 = sst [smem:[#allocation24_spill]] %s2011_s21  ;;  %p66_p0 = scmp.ne.s32.totalorder %s1999_s18, %s1995_s17 }
  0x15   : > { %2584 = sst [smem:[#allocation25_spill]] %s2015_s22  ;;  %p2551_p1 = scmp.eq.s32.totalorder %s2125_s23, 0 }
  0x16   : > { %p318_p3 = scmp.eq.s32.totalorder %s1450_s24, 1  ;;  %p1451_p5 = scmp.ge.s32.totalorder %s2015_s22, 1 }
  0x17   : > { %p2134_p4 = por %p2551_p1, %p66_p0  ;;  %p325_p7 = scmp.lt.s32.totalorder %s2015_s22, 3 }
  0x18   : > { %p2139_p6 = por %p318_p3, %p66_p0  ;;  %s2017_s28 = smov [#allocation11]  }
  0x19   : > { %s2585_s25 = scalar_select %p2134_p4, 1, 0 }
  0x1a   : > { %s2586_s26 = scalar_select %p2139_p6, 1, 0 }
  0x1b   : > { %p2144_p8 = pnand %p1451_p5, %p325_p7  ;;  %s337_s29 = sshll.u32 %s2017_s28, 4  ;;  %s338_s29 = int_to_ptr.vmem [resolvable:$true] %s337_s29 }
  0x1c   : > { %2587 = sst [smem:[#allocation26_spill]] %s2586_s26  ;;  %s44_s12 = sadd.s32 1, %s2011_s21 }
  0x1d   : > { %s2588_s27 = scalar_select %p2144_p8, 1, 0 }
  0x1e   : > { %p1628_p9 = pneg %p2144_p8  ;;  %s2590_s3 = sld [smem:[#allocation31_spill]] }
  0x20   : > { %p2153_p11 = pnand %p1628_p9, %p2551_p1 }
  0x22   : > { %s2589_s30 = scalar_select %p2153_p11, 1, 0 }
  0x23   : > { %p2166_p13 = pneg %p2153_p11 }
  0x24   : > { %s1747_s15 = scalar_lea.hbm %s2590_s3, 256 }
  0x25   : > { %p1748_p12 = scmp.ne.s32.totalorder %s2590_s3, %s1747_s15  ;;  %p1754_p5 = scmp.lt.u32.totalorder %s1747_s15, %s2590_s3 }
  0x26   : > { %s2591_s28 = scalar_select %p2166_p13, 1, 0 }
  0x27   : > { %p1750_p0 = pnand %p2166_p13, %p1748_p12 }
  0x29   : > { %p1751_p3 = pneg %p1750_p0 }
  0x2b   : > { %p1756_p7 = pnand %p1754_p5, %p1751_p3 }
  0x2d   : > { %1759 = shalt.err (!%p1756_p7)
}
  0x2e   : > { %s1760_s13 = scalar_lea.vmem %s338_s29, 256  ;;  %p1768_p2 = scmp.lt.s32.totalorder %s338_s29, %s338_s29 }
  0x2f   : > { %p1761_p9 = scmp.ne.s32.totalorder %s338_s29, %s1760_s13  ;;  %p1769_p6 = scmp.lt.s32.totalorder %s1760_s13, %s1760_s13 }
  0x31   : > { %p1763_p10 = pnand %p1761_p9, %p2166_p13  ;;  %p1770_p4 = por %p1769_p6, %p1768_p2 }
  0x33   : > { %p1764_p1 = pneg %p1763_p10 }
  0x35   : > { %p1771_p8 = pnand %p1770_p4, %p1764_p1 }
  0x37   : > { %1774 = shalt.err (!%p1771_p8)
}
  0x38   : > { %s2555_s14 = smov 64   ;;  %s2556_s17 = smov 4  }
  0x39   : > { %1631 = dma.hbm_to_vmem [thread:$0]  (!%p2153_p11), %s2590_s3, 256, %s338_s29, [#allocation12], %s2555_s14, %s2555_s14, %s2556_s17  }
  0x3a   : > { %p46_p1 = scmp.ge.s32.totalorder %s44_s12, 2  ;;  %s53_s16 = sadd.s32 1, %s2003_s19 }
  0x3b   : > { %p60_p2 = scmp.ne.s32.totalorder %s2003_s19, %s1999_s18  ;;  %p61_p4 = scmp.eq.s32.totalorder %s2015_s22, 0 }
  0x3c   : > { %s2635_s12 = smov (%p46_p1, %s44_s12), 0  ;;  %p2593_p8 = scmp.eq.s32.totalorder %s2125_s23, 1 }
  0x3d   : > { %2592 = sst [smem:[#allocation27_spill]] %s2635_s12  ;;  %p62_p6 = por %p61_p4, %p60_p2 }
  0x3e   : > { %p2193_p10 = por %p2593_p8, %p60_p2  ;;  %s48_s13 = ssub.s32 %s2011_s21, %s2635_s12 }
  0x3f   : > { %p1655_p12 = scmp.lt.s32.totalorder %s2015_s22, 2  ;;  %p51_p0 = scmp.eq.s32.totalorder %s48_s13, 0 }
  0x40   : > { %s2594_s24 = scalar_select %p2193_p10, 1, 0 }
  0x41   : > { %s2558_s11 = sand.u32 1, %s2003_s19   ;;  %s2206_s26 = sshll.u32 %s2011_s21, 7 }
  0x42   : > { %2595 = sst [smem:[#allocation28_spill]] %s2594_s24  ;;  %s2203_s29 = sshll.u32 %s2558_s11, 3 }
  0x43   : > { %s2209_s15 = scalar_select %p51_p0, %s2003_s19, %s53_s16  }
  0x44   : > { %p2211_p3 = pnand %p1655_p12, %p62_p6  ;;  %s409_s17 = sand.u32 1, %s2015_s22  }
  0x45   : > { %2596 = sst [smem:[#allocation29_spill]] %s2209_s15  ;;  %s2598_s1 = sld [smem:[#allocation30_spill]] }
  0x46   : > { %s2597_s14 = scalar_select %p2211_p3, 1, 0 }
  0x47   : > { %s413_s11 = scalar_lea.vmem [#allocation8], %s2203_s29  ;;  %s2020_s16 = smov [#allocation13]  }
  0x48   : > { %s420_s21 = sshll.u32 %s413_s11, 4  ;;  %s2225_s15 = sshll.u32 %s2020_s16, 4  ;;  %s2223_s21 = int_to_ptr.vmem [resolvable:$true] %s420_s21  ;;  %s360_s15 = int_to_ptr.vmem [resolvable:$true] %s2225_s15 }
  0x49   : > { %s2227_s24 = scalar_lea.sflag [#allocation9], %s409_s17  ;;  %p2233_p7 = pneg %p2211_p3 }
  0x4b   : > { %s2220_s13 = scalar_lea.hbm %s2598_s1, %s2206_s26  ;;  %s1780_s22 = scalar_lea.hbm %s2598_s1, 256 }
  0x4c   : > { %s1775_s10 = scalar_lea.hbm %s2220_s13, 128  ;;  %p1781_p2 = scmp.lt.u32.totalorder %s2220_s13, %s2598_s1 }
  0x4d   : > { %p1776_p5 = scmp.ne.s32.totalorder %s2220_s13, %s1775_s10  ;;  %p1782_p4 = scmp.lt.u32.totalorder %s1780_s22, %s1775_s10 }
  0x4e   : > { %s2599_s3 = scalar_select %p2233_p7, 1, 0 }
  0x4f   : > { %p1778_p9 = pnand %p2233_p7, %p1776_p5  ;;  %p1783_p6 = por %p1782_p4, %p1781_p2 }
  0x50   : > { %p1784_p8 = scmp.lt.u32.totalorder %s1775_s10, %s2220_s13 }
  0x51   : > { %p1779_p1 = pneg %p1778_p9 }
  0x52   : > { %p1785_p12 = por %p1784_p8, %p1783_p6 }
  0x54   : > { %p1786_p0 = pnand %p1785_p12, %p1779_p1 }
  0x56   : > { %1789 = shalt.err (!%p1786_p0)
}
  0x57   : > { %s1790_s17 = scalar_lea.vmem %s2223_s21, 128  ;;  %s2021_s12 = smov [#allocation8]  }
  0x58   : > { %p1791_p5 = scmp.ne.s32.totalorder %s2223_s21, %s1790_s17  ;;  %s1795_s11 = sshll.u32 %s2021_s12, 4  ;;  %s1796_s11 = int_to_ptr.vmem [resolvable:$false] %s1795_s11 }
  0x59   : > { %s1797_s20 = scalar_lea.vmem %s1796_s11, 256  ;;  %p1798_p11 = scmp.lt.s32.totalorder %s2223_s21, %s1796_s11 }
  0x5a   : > { %p1793_p9 = pnand %p1791_p5, %p2233_p7  ;;  %p1799_p13 = scmp.lt.s32.totalorder %s1797_s20, %s1790_s17 }
  0x5c   : > { %p1794_p10 = pneg %p1793_p9  ;;  %p1800_p2 = por %p1799_p13, %p1798_p11 }
  0x5e   : > { %p1801_p4 = pnand %p1800_p2, %p1794_p10 }
  0x60   : > { %1804 = shalt.err (!%p1801_p4)
}
  0x61   : > { %1644 = dma.hbm_to_vmem [thread:$0]  (!%p2211_p3), %s2220_s13, 128, %s2223_s21, %s2227_s24  }
  0x62   : > { %s1805_s16 = scalar_lea.hbm %s2544_s7, 256  ;;  %p2600_p11 = scmp.ne.s32.totalorder %s2591_s28, 0 }
  0x63   : > { %p1806_p1 = scmp.ne.s32.totalorder %s2544_s7, %s1805_s16  ;;  %p1812_p6 = scmp.lt.u32.totalorder %s1805_s16, %s2544_s7 }
  0x65   : > { %p1808_p13 = pnand %p1806_p1, %p2600_p11 }
  0x67   : > { %p1809_p10 = pneg %p1808_p13 }
  0x69   : > { %p1814_p8 = pnand %p1812_p6, %p1809_p10 }
  0x6b   : > { %1817 = shalt.err (!%p1814_p8)
}
  0x6c   : > { %s1818_s20 = scalar_lea.vmem %s360_s15, 256  ;;  %p1826_p9 = scmp.lt.s32.totalorder %s360_s15, %s360_s15 }
  0x6d   : > { %p1819_p12 = scmp.ne.s32.totalorder %s360_s15, %s1818_s20  ;;  %p1827_p2 = scmp.lt.s32.totalorder %s1818_s20, %s1818_s20 }
  0x6f   : > { %p1821_p0 = pnand %p1819_p12, %p2600_p11  ;;  %p1828_p4 = por %p1827_p2, %p1826_p9 }
  0x71   : > { %p1822_p5 = pneg %p1821_p0 }
  0x73   : > { %p1829_p3 = pnand %p1828_p4, %p1822_p5 }
  0x75   : > { %1832 = shalt.err (!%p1829_p3)
}
  0x76   : > { %p2601_p1 = scmp.ne.s32.totalorder %s2589_s30, 0  ;;  %s2602_s1 = smov 4  }
  0x77   : > { %s2603_s21 = smov 64   ;;  %s2022_s22 = smov [#allocation14]  }
  0x78   : > { %1634 = dma.hbm_to_vmem [thread:$0]  (!%p2601_p1), %s2544_s7, 256, %s360_s15, [#allocation12], %s2603_s21, %s2603_s21, %s2602_s1  }
  0x79   : > { %s373_s16 = sshll.u32 %s2022_s22, 4  ;;  %s1833_s11 = scalar_lea.hbm %s2545_s8, 16  ;;  %s374_s16 = int_to_ptr.vmem [resolvable:$true] %s373_s16 }
  0x7a   : > { %p1834_p3 = scmp.ne.s32.totalorder %s2545_s8, %s1833_s11  ;;  %p1840_p6 = scmp.lt.u32.totalorder %s1833_s11, %s2545_s8 }
  0x7c   : > { %p1836_p13 = pnand %p1834_p3, %p2600_p11 }
  0x7e   : > { %p1837_p10 = pneg %p1836_p13 }
  0x80   : > { %p1842_p8 = pnand %p1840_p6, %p1837_p10 }
  0x82   : > { %1845 = shalt.err (!%p1842_p8)
}
  0x83   : > { %s1846_s15 = scalar_lea.vmem %s374_s16, 16  ;;  %s1853_s1 = scalar_lea.vmem %s374_s16, 32 }
  0x84   : > { %p1847_p12 = scmp.ne.s32.totalorder %s374_s16, %s1846_s15  ;;  %p1854_p9 = scmp.lt.s32.totalorder %s374_s16, %s374_s16 }
  0x85   : > { %p1855_p2 = scmp.lt.s32.totalorder %s1853_s1, %s1846_s15 }
  0x86   : > { %p1849_p0 = pnand %p1847_p12, %p2600_p11 }
  0x87   : > { %p1856_p4 = por %p1855_p2, %p1854_p9 }
  0x88   : > { %p1850_p5 = pneg %p1849_p0 }
  0x8a   : > { %p1857_p7 = pnand %p1856_p4, %p1850_p5 }
  0x8c   : > { %1860 = shalt.err (!%p1857_p7)
}
  0x8d   : > { %1637 = dma.hbm_to_vmem [thread:$0]  (!%p2601_p1), %s2545_s8, 16, %s374_s16, [#allocation15]  }
  0x8e   : > { %s2301_s28 = scalar_lea.hbm %s2537_s0, %s2206_s26  ;;  %s394_s13 = scalar_lea.vmem [#allocation5], %s2203_s29 }
  0x8f   : > { %s402_s10 = sshll.u32 %s394_s13, 4  ;;  %s2604_s30 = sand.u32 1, %s2003_s19   ;;  %s403_s10 = int_to_ptr.vmem [resolvable:$true] %s402_s10 }
  0x90   : > { %s391_s22 = scalar_lea.sflag [#allocation6], %s2604_s30  ;;  %s1861_s12 = scalar_lea.hbm %s2301_s28, 128 }
  0x91   : > { %p1862_p7 = scmp.ne.s32.totalorder %s2301_s28, %s1861_s12  ;;  %p2605_p11 = scmp.ne.s32.totalorder %s2599_s3, 0 }
  0x92   : > { %s1866_s11 = scalar_lea.hbm %s2537_s0, 256  ;;  %p1867_p1 = scmp.lt.u32.totalorder %s2301_s28, %s2537_s0 }
  0x93   : > { %p1864_p3 = pnand %p1862_p7, %p2605_p11  ;;  %p1868_p10 = scmp.lt.u32.totalorder %s1866_s11, %s1861_s12 }
  0x94   : > { %p1870_p8 = scmp.lt.u32.totalorder %s1861_s12, %s2301_s28 }
  0x95   : > { %p1865_p13 = pneg %p1864_p3  ;;  %p1869_p6 = por %p1868_p10, %p1867_p1 }
  0x97   : > { %p1871_p12 = por %p1870_p8, %p1869_p6 }
  0x99   : > { %p1872_p0 = pnand %p1871_p12, %p1865_p13 }
  0x9b   : > { %1875 = shalt.err (!%p1872_p0)
}
  0x9c   : > { %s1876_s1 = scalar_lea.vmem %s403_s10, 128  ;;  %s2023_s9 = smov [#allocation5]  }
  0x9d   : > { %p1877_p5 = scmp.ne.s32.totalorder %s403_s10, %s1876_s1  ;;  %s1881_s21 = sshll.u32 %s2023_s9, 4  ;;  %s1882_s21 = int_to_ptr.vmem [resolvable:$false] %s1881_s21 }
  0x9e   : > { %s1883_s4 = scalar_lea.vmem %s1882_s21, 256  ;;  %p1884_p4 = scmp.lt.s32.totalorder %s403_s10, %s1882_s21 }
  0x9f   : > { %p1879_p9 = pnand %p1877_p5, %p2605_p11  ;;  %p1885_p7 = scmp.lt.s32.totalorder %s1883_s4, %s1876_s1 }
  0xa1   : > { %p1880_p2 = pneg %p1879_p9  ;;  %p1886_p3 = por %p1885_p7, %p1884_p4 }
  0xa3   : > { %p1887_p1 = pnand %p1886_p3, %p1880_p2 }
  0xa5   : > { %1890 = shalt.err (!%p1887_p1)
}
  0xa6   : > { %p2606_p10 = scmp.ne.s32.totalorder %s2597_s14, 0  ;;  %s2327_s30 = scalar_lea.hbm %s2539_s2, %s2206_s26 }
  0xa7   : > { %s431_s12 = scalar_lea.vmem [#allocation10], %s2203_s29  ;;  %s1891_s17 = scalar_lea.hbm %s2327_s30, 128 }
  0xa8   : > { %1641 = dma.hbm_to_vmem [thread:$0]  (!%p2606_p10), %s2301_s28, 128, %s403_s10, %s391_s22  }
  0xa9   : > { %s438_s16 = sshll.u32 %s431_s12, 4  ;;  %p1892_p13 = scmp.ne.s32.totalorder %s2327_s30, %s1891_s17  ;;  %s439_s16 = int_to_ptr.vmem [resolvable:$true] %s438_s16 }
  0xaa   : > { %s1896_s28 = scalar_lea.hbm %s2539_s2, 256  ;;  %p1897_p12 = scmp.lt.u32.totalorder %s2327_s30, %s2539_s2 }
  0xab   : > { %p1894_p6 = pnand %p1892_p13, %p2605_p11  ;;  %p1898_p0 = scmp.lt.u32.totalorder %s1896_s28, %s1891_s17 }
  0xac   : > { %p1900_p9 = scmp.lt.u32.totalorder %s1891_s17, %s2327_s30 }
  0xad   : > { %p1895_p8 = pneg %p1894_p6  ;;  %p1899_p5 = por %p1898_p0, %p1897_p12 }
  0xaf   : > { %p1901_p2 = por %p1900_p9, %p1899_p5 }
  0xb1   : > { %p1902_p4 = pnand %p1901_p2, %p1895_p8 }
  0xb3   : > { %1905 = shalt.err (!%p1902_p4)
}
  0xb4   : > { %s1906_s29 = scalar_lea.vmem %s439_s16, 128  ;;  %s2024_s26 = smov [#allocation10]  }
  0xb5   : > { %p1907_p7 = scmp.ne.s32.totalorder %s439_s16, %s1906_s29  ;;  %s1911_s15 = sshll.u32 %s2024_s26, 4  ;;  %s1912_s15 = int_to_ptr.vmem [resolvable:$false] %s1911_s15 }
  0xb6   : > { %s1913_s1 = scalar_lea.vmem %s1912_s15, 256  ;;  %p1914_p13 = scmp.lt.s32.totalorder %s439_s16, %s1912_s15 }
  0xb7   : > { %p1909_p3 = pnand %p1907_p7, %p2605_p11  ;;  %p1915_p6 = scmp.lt.s32.totalorder %s1913_s1, %s1906_s29 }
  0xb9   : > { %p1910_p1 = pneg %p1909_p3  ;;  %p1916_p10 = por %p1915_p6, %p1914_p13 }
  0xbb   : > { %p1917_p0 = pnand %p1916_p10, %p1910_p1 }
  0xbd   : > { %1920 = shalt.err (!%p1917_p0)
}
  0xbe   : > { %p2607_p12 = scmp.ne.s32.totalorder %s2597_s14, 0  ;;  %p2608_p8 = scmp.ne.s32.totalorder %s2588_s27, 0 }
  0xbf   : > { %s2351_s3 = sand.u32 (!%p2608_p8), 1, %s1999_s18   ;;  %p2609_p11 = scmp.ne.s32.totalorder (!%p2608_p8), %s2585_s25, 0 }
  0xc0   : > { %1647 = dma.hbm_to_vmem [thread:$0]  (!%p2607_p12), %s2327_s30, 128, %s439_s16, %s2227_s24  }
  0xc1   : > { %447 = sbr.rel (%p2608_p8) target bundleno = 1525 (0x5f5), region = 64  ;;  %s2354_s9 = sshll.u32 (!%p2608_p8), %s2351_s3, 3 }
  0xc2   : > { %s450_s21 = scalar_lea.sflag (!%p2608_p8), [#allocation6], %s2351_s3  ;;  %s453_s4 = scalar_lea.vmem (!%p2608_p8), [#allocation5], %s2354_s9 }
  0xc8   : > { %1974 = dma.done.wait (%p2609_p11), %s450_s21, 128  }
  0xc9   : > { %1976 = vsyncadd (%p2609_p11), %s450_s21, 4294967168  ;;  %s458_s27 = sand.u32 1, %s2125_s23   ;;  %s462_s24 = scalar_lea.vmem [#allocation8], %s2354_s9 }
  0xca   : > { %s459_s14 = scalar_lea.sflag [#allocation9], %s458_s27 }
  0xcb   : > { %1978 = dma.done.wait (%p2609_p11), %s459_s14, 256  }
  0xcc   : > { %1980 = vsyncadd (%p2609_p11), %s459_s14, 4294967040  ;;  %s471_s6 = scalar_lea.vmem [#allocation10], %s2354_s9  ;;  %p2610_p10 = scmp.eq.s32.totalorder %s2125_s23, 0 }
  0xce   : > { %1982 = dma.done.wait (%p2610_p10), [#allocation12], 512   ;;  %p2611_p5 = pmov %p2610_p10 }
  0xd0   : > { %1984 = vsyncadd (%p2611_p5), [#allocation12], 4294966784  ;;  %p2612_p9 = pmov %p2611_p5 }
  0xd1   : > { %p2613_p2 = pmov %p2611_p5 }
  0xd2   : > { %1986 = dma.done.wait (%p2612_p9), [#allocation15], 16  }
  0xd3   : > { %1988 = vsyncadd (%p2613_p2), [#allocation15], 4294967280  ;;  %v2025_v0 = vmov 0.0   ;;  %vm2026_vm0 = vmmov 0   ;;  %v1721_v1 = vld [vmem:[%s2542_s5] sm:$0xff]   ;;  %v1722_v2 = vld [vmem:[%s2542_s5 + $0x8] sm:$0xff]  }
  0xd4   : > { %1528 = vmatprep.subr.bf16.mxu0 %v2025_v0  ;;  %1532 = vmatprep.mubr.msk.bf16.mxu0 %vm2026_vm0, %v2025_v0  ;;  %v537_v3 = vld [vmem:[%s462_s24] sm:$0xff]  ;;  %vm564_vm1 = vcmask 261120   ;;  %v679_v7 = vld [vmem:[%s453_s4] sm:$0xff]  ;;  %s2614_s17 = sld [smem:[#allocation33_spill]]  ;;  %vm675_vm2 = vcmask 257024   ;;  %s2615_s28 = sld [smem:[#allocation32_spill]] }
  0xd5   : > { %1536 = vmatprep.subr.bf16.mxu1 %v2025_v0  ;;  %1540 = vmatprep.mubr.msk.bf16.mxu1 %vm2026_vm0, %v2025_v0  ;;  %v1723_v4 = vld [vmem:[#allocation11] sm:$0xff]   ;;  %v538_v5 = vpack.c.bf16 %v537_v3, %v537_v3  ;;  %v1724_v6 = vld [vmem:[#allocation11 + $0x8] sm:$0xff]   ;;  %v680_v8 = vpack.c.bf16 %v679_v7, %v679_v7  ;;  %v1725_v9 = vld [vmem:[#allocation13] sm:$0xff]   ;;  %vm751_vm3 = vcmask 64512   ;;  %s2027_s10 = smov 112   ;;  %s2028_s22 = smov 120  }
  0xd6   : > { %1529 = vmatpush3.bf16.msra.mxu0 %v1721_v1  ;;  %1537 = vmatpush3.bf16.msra.mxu1 %v1725_v9  ;;  %v1726_v10 = vld [vmem:[#allocation13 + $0x8] sm:$0xff]   ;;  %s2029_s29 = smov 104   ;;  %v1474_v30 = vld [vmem:[#allocation14] ss:$0 sm:$0xff]  ;;  %vm811_vm4 = vcmask 1043456   ;;  %s2030_s26 = smov 8  }
  0xd7   : > { %1530 = vmatprep.subr.bf16.mxu0 %v2025_v0  ;;  %1538 = vmatprep.subr.bf16.mxu1 %v2025_v0  ;;  %v539_v11 = vld [vmem:[%s471_s6] sm:$0xff]  ;;  %s2616_s21 = sld [smem:[#allocation34_spill]]  ;;  %s2031_s24 = smov 16   ;;  %vm979_vm5 = vcmask 130112   ;;  %vm1095_vm6 = vcmask 195712   ;;  %vm1211_vm7 = vcmask 261312  }
  0xd8   : > { %v540_v12 = vpack.c.bf16 %v539_v11, %v539_v11  ;;  %s2032_s6 = smov 24   ;;  %s2618_s25 = sld [smem:[#allocation23_spill]] }
  0xd9   : > { %s2619_s23 = sld [smem:[#allocation35_spill]]  ;;  %s2620_s12 = sld [smem:[#allocation28_spill]] }
  0xda   : > { %1531 = vmatpush3.bf16.msra.mxu0 %v1722_v2  ;;  %1539 = vmatpush3.bf16.msra.mxu1 %v1726_v10  ;;  %v1470_v13 = vld [vmem:[%s2614_s17] ss:$0 sm:$0xff]  ;;  %s531_s17 = scalar_lea.vmem [#allocation16], %s2354_s9 }
  0xdb   : > { %1544 = vmatprep.subr.bf16.mxu0 %v2025_v0  ;;  %1552 = vmatprep.subr.bf16.mxu1 %v2025_v0  ;;  %v1478_v20 = vld [vmem:[%s2615_s28] ss:$0 sm:$0xff]  ;;  %s1297_s11 = sshll.u32 %s531_s17, 4  ;;  %s2489_s11 = int_to_ptr.vmem [resolvable:$true] %s1297_s11 }
  0xdc   : > { %s1921_s9 = scalar_lea.vmem %s2489_s11, 128 }
  0xdd   : > { %1533 = vmatmul.mubr.msk.bf16.vlgmr.msra.gmra.mrb[0].mxu0 %vm564_vm1, %v538_v5  ;;  %1541 = vmatmul.mubr.msk.bf16.vlgmr.msra.gmra.mrb[0].mxu1 %vm564_vm1, %v540_v12  ;;  %s2617_s4 = smov %s2616_s21  ;;  %p1922_p4 = scmp.ne.s32.totalorder %s2489_s11, %s1921_s9 }
  0xde   : > { %1545 = vmatpush3.bf16.msra.mxu0 %v1723_v4  ;;  %1548 = vmatprep.mubr.msk.bf16.mxu0 %vm2026_vm0, %v2025_v0  ;;  %s1497_s16 = sshll.u32 %s2618_s25, 7 }
  0xdf   : > { %1546 = vmatprep.subr.bf16.mxu0 %v2025_v0  ;;  %1554 = vmatprep.mubr.msk.bf16.mxu1 %vm2026_vm0, %v2025_v0  ;;  %p2622_p7 = scmp.ne.s32.totalorder %s2620_s12, 0 }
  0xe1   : > { %p1923_p3 = pnand %p1922_p4, %p2622_p7 }
  0xe2   : > { %1547 = vmatpush3.bf16.msra.mxu0 %v1724_v6 }
  0xe3   : > { %1558 = vmatprep.subr.bf16.mxu0 %v2025_v0  ;;  %p1924_p1 = pneg %p1923_p3 }
  0xe5   : > { %1549 = vmatmul.mubr.msk.bf16.vlgmr.msra.gmra.mrb[4].mxu0 %vm564_vm1, %v680_v8 }
  0xe6   : > { %1560 = vmatprep.mubr.msk.bf16.mxu0 %vm2026_vm0, %v2025_v0 }
 0x1b0   : > { %v602_v14 = vpop.f32.mrb[0].mxu0  ;;  %v668_v31 = vpop.f32.mrb[0].mxu1 }
 0x1b1   : > { %v603_v15 = vadd.f32 %v1470_v13, %v602_v14  ;;  %v1534_v16 = vpop.f32.mrb[1].mxu0  ;;  %v669_v32 = vadd.f32 %v1474_v30, %v668_v31  ;;  %v1542_v33 = vpop.f32.mrb[1].mxu1 }
 0x1b2   : > { %v605_v17 = vpop.f32.mrb[2].mxu0  ;;  %v671_v34 = vpop.f32.mrb[2].mxu1 }
 0x1b3   : > { %v674_v18 = vpack.c.bf16 %v603_v15, %v603_v15  ;;  %v1535_v19 = vpop.f32.mrb[3].mxu0  ;;  %v677_v35 = vpack.c.bf16 %v669_v32, %v669_v32  ;;  %v1543_v36 = vpop.f32.mrb[3].mxu1 }
 0x1b5   : > { %676 = vst.msk [vmem:[#allocation2] sm:$0xf] %vm675_vm2, %v674_v18  ;;  %678 = vst.msk [vmem:[#allocation3] sm:$0xf] %vm675_vm2, %v677_v35 }
 0x1b8   : > { %v742_v21 = vpop.f32.mrb[4].mxu0 }
 0x1b9   : > { %v1550_v22 = vpop.f32.mrb[5].mxu0  ;;  %v743_v24 = vadd.f32 %v1478_v20, %v742_v21 }
 0x1ba   : > { %v745_v23 = vpop.f32.mrb[6].mxu0 }
 0x1bb   : > { %v1551_v25 = vpop.f32.mrb[7].mxu0  ;;  %v748_v29 = vpack.c.bf16 %v743_v24, %v743_v24 }
 0x1bc   : > { %v749_v26 = vld [vmem:[#allocation2] sm:$0xf]  ;;  %v750_v37 = vld [vmem:[#allocation3] sm:$0xf] }
 0x1bd   : > { %v756_v27 = vsel %vm751_vm3, %v749_v26, 0  ;;  %v1484_v28 = vcombine.low %v749_v26, %v749_v26  ;;  %v813_v38 = vsel %vm811_vm4, %v750_v37, 0  ;;  %v1486_v3 = vcombine.low %v750_v37, %v750_v37 }
 0x1be   : > { %1553 = vmatpush3.bf16.xpose.msra.mxu1 %v756_v27  ;;  %1559 = vmatpush3.bf16.msra.mxu0 %v813_v38 }
 0x1bf   : > { %983 = vrot.lane.b32.xlu1 %v1484_v28, %s2027_s10  ;;  %864 = vrot.lane.b32.xlu0 %v1484_v28, %s2028_s22 }
 0x1c0   : > { %1564 = vmatprep.subr.bf16.mxu1 %v2025_v0  ;;  %1570 = vmatprep.subr.bf16.mxu0 %v2025_v0 }
 0x1c3   : > { %981 = vrot.lane.b32.xlu1 %v748_v29, %s2027_s10  ;;  %859 = vrot.lane.b32.xlu0 %v748_v29, %s2028_s22 }
 0x1c5   : > { %1555 = vmatmul.mubr.msk.bf16.vlgmr.msra.gmra.mrb[4].mxu1 %vm751_vm3, %v748_v29 }
 0x1c6   : > { %1566 = vmatprep.mubr.msk.bf16.mxu1 %vm2026_vm0, %v2025_v0 }
 0x1c7   : > { %1097 = vrot.lane.b32.xlu1 %v748_v29, %s2029_s29  ;;  %1099 = vrot.lane.b32.xlu0 %v1484_v28, %s2029_s29 }
 0x231   : > { %v865_v39 = vpop.permute.xlu0 %864  ;;  %v984_v41 = vpop.permute.xlu1 %983 }
 0x232   : > { %v870_v40 = vsel %vm751_vm3, %v865_v39, 0  ;;  %v989_v43 = vsel %vm751_vm3, %v984_v41, 0 }
 0x233   : > { %1565 = vmatpush3.bf16.xpose.msra.mxu1 %v870_v40 }
 0x234   : > { %1576 = vmatprep.subr.bf16.mxu1 %v2025_v0 }
 0x235   : > { %v860_v42 = vpop.permute.xlu0 %859  ;;  %v982_v45 = vpop.permute.xlu1 %981 }
 0x239   : > { %v1100_v44 = vpop.permute.xlu0 %1099  ;;  %v1098_v47 = vpop.permute.xlu1 %1097 }
 0x23a   : > { %1567 = vmatmul.mubr.msk.bf16.vlgmr.msra.gmra.mrb[8].mxu1 %vm751_vm3, %v860_v42  ;;  %v1105_v46 = vsel %vm751_vm3, %v1100_v44, 0 }
 0x23b   : > { %1577 = vmatpush3.bf16.xpose.msra.mxu1 %v989_v43  ;;  %1578 = vmatprep.mubr.msk.bf16.mxu1 %vm2026_vm0, %v2025_v0 }
 0x23c   : > { %1588 = vmatprep.subr.bf16.mxu1 %v2025_v0 }
 0x242   : > { %1579 = vmatmul.mubr.msk.bf16.vlgmr.msra.gmra.mrb[12].mxu1 %vm751_vm3, %v982_v45 }
 0x243   : > { %1589 = vmatpush3.bf16.xpose.msra.mxu1 %v1105_v46  ;;  %1590 = vmatprep.mubr.msk.bf16.mxu1 %vm2026_vm0, %v2025_v0 }
 0x244   : > { %1600 = vmatprep.subr.bf16.mxu1 %v2025_v0 }
 0x24a   : > { %1591 = vmatmul.mubr.msk.bf16.vlgmr.msra.gmra.mrb[16].mxu1 %vm751_vm3, %v1098_v47 }
 0x24b   : > { %1604 = vmatprep.mubr.msk.bf16.mxu1 %vm2026_vm0, %v2025_v0 }
 0x298   : > { %v792_v48 = vpop.f32.mrb[4].mxu1 }
 0x299   : > { %v1556_v49 = vpop.f32.mrb[5].mxu1  ;;  %v798_v50 = vsel %vm751_vm3, %v792_v48, -inf }
 0x29a   : > { %799 = vmax.xlane.f32.xlu0 %v798_v50  ;;  %v795_v51 = vpop.f32.mrb[6].mxu1 }
 0x29b   : > { %v1557_v52 = vpop.f32.mrb[7].mxu1 }
 0x29c   : > { %v1729_v52 = vld [vmem:[%s2616_s21] sm:$0xff]  }
 0x29d   : > { %1601 = vmatpush3.bf16.msra.mxu1 %v1729_v52 }
 0x29e   : > { %1602 = vmatprep.subr.bf16.mxu1 %v2025_v0 }
 0x30d   : > { %v906_v53 = vpop.f32.mrb[8].mxu1 }
 0x30e   : > { %v1568_v54 = vpop.f32.mrb[9].mxu1  ;;  %v912_v55 = vsel %vm751_vm3, %v906_v53, -inf }
 0x30f   : > { %913 = vmax.xlane.f32.xlu1 %v912_v55  ;;  %v909_v56 = vpop.f32.mrb[10].mxu1  ;;  %v1730_v55 = vld [vmem:[%s2617_s4 + $0x8] sm:$0xff]  }
 0x310   : > { %v1569_v57 = vpop.f32.mrb[11].mxu1  ;;  %1603 = vmatpush3.bf16.msra.mxu1 %v1730_v55 }
 0x315   : > { %v1025_v58 = vpop.f32.mrb[12].mxu1 }
 0x316   : > { %v1580_v59 = vpop.f32.mrb[13].mxu1  ;;  %v1031_v60 = vsel %vm751_vm3, %v1025_v58, -inf }
 0x317   : > { %1032 = vmax.xlane.f32.xlu0 %v1031_v60  ;;  %v1028_v61 = vpop.f32.mrb[14].mxu1 }
 0x318   : > { %v1581_v62 = vpop.f32.mrb[15].mxu1 }
 0x31d   : > { %v1141_v63 = vpop.f32.mrb[16].mxu1 }
 0x31e   : > { %v1592_v1 = vpop.f32.mrb[17].mxu1  ;;  %v1147_v2 = vsel %vm751_vm3, %v1141_v63, -inf }
 0x31f   : > { %1148 = vmax.xlane.f32.xlu0 %v1147_v2  ;;  %v1144_v4 = vpop.f32.mrb[18].mxu1 }
 0x320   : > { %925 = vrot.lane.b32.xlu1 %v1486_v3, %s2028_s22  ;;  %v1593_v5 = vpop.f32.mrb[19].mxu1 }
 0x324   : > { %1157 = vrot.lane.b32.xlu1 %v1486_v3, %s2029_s29  ;;  %s1283_s29 = scalar_lea.sflag [#allocation7], %s2351_s3 }
 0x327   : > { %v800_v6 = vpop.xlane.xlu0 %799 }
 0x328   : > { %v801_v7 = vsub.f32 %v792_v48, %v800_v6 }
 0x32a   : > { %v802_v8 = vmul.f32 1.442695, %v801_v7  ;;  %v1492_v7 = vld [vmem:[%s2619_s23] ss:$0 sm:$0xff] }
 0x32c   : > { %1731 = vpow2.f32 %v802_v8 }
 0x335   : > { %1041 = vrot.lane.b32.xlu0 %v1486_v3, %s2027_s10  ;;  %s2621_s10 = sld [smem:[#allocation36_spill]] }
 0x336   : > { %v1732_v9 = vpop.eup %1731 }
 0x337   : > { %v807_v10 = vpack.c.bf16 %v1732_v9, %v1732_v9  ;;  %v804_v26 = vsel %vm751_vm3, %v1732_v9, 0.0 }
 0x339   : > { %1561 = vmatmul.mubr.msk.bf16.vlgmr.msra.gmra.mrb[8].mxu0 %vm751_vm3, %v807_v10 }
 0x33a   : > { %1572 = vmatprep.mubr.msk.bf16.mxu0 %vm2026_vm0, %v2025_v0 }
 0x33b   : > { %s2487_s22 = scalar_lea.hbm %s2621_s10, %s1497_s16 }
 0x39c   : > { %v914_v11 = vpop.xlane.xlu1 %913 }
 0x39d   : > { %v915_v12 = vsub.f32 %v906_v53, %v914_v11 }
 0x39f   : > { %v916_v13 = vmul.f32 1.442695, %v915_v12 }
 0x3a0   : > { %v926_v14 = vpop.permute.xlu1 %925 }
 0x3a1   : > { %1733 = vpow2.f32 %v916_v13  ;;  %v931_v15 = vsel %vm811_vm4, %v926_v14, 0 }
 0x3a2   : > { %1571 = vmatpush3.bf16.msra.mxu0 %v931_v15 }
 0x3a3   : > { %1582 = vmatprep.subr.bf16.mxu0 %v2025_v0 }
 0x3a4   : > { %v1033_v16 = vpop.xlane.xlu0 %1032  ;;  %v1158_v29 = vpop.permute.xlu1 %1157 }
 0x3a5   : > { %v1034_v17 = vsub.f32 %v1025_v58, %v1033_v16  ;;  %v1163_v32 = vsel %vm811_vm4, %v1158_v29, 0 }
 0x3a7   : > { %v1035_v18 = vmul.f32 1.442695, %v1034_v17 }
 0x3a9   : > { %1735 = vpow2.f32 %v1035_v18 }
 0x3ab   : > { %v1734_v19 = vpop.eup %1733 }
 0x3ac   : > { %v1149_v20 = vpop.xlane.xlu0 %1148  ;;  %v918_v21 = vsel %vm751_vm3, %v1734_v19, 0.0  ;;  %v921_v22 = vpack.c.bf16 %v1734_v19, %v1734_v19 }
 0x3ad   : > { %v1150_v23 = vsub.f32 %v1141_v63, %v1149_v20  ;;  %919 = vadd.xlane.f32.xlu1 %v918_v21 }
 0x3ae   : > { %1573 = vmatmul.mubr.msk.bf16.vlgmr.msra.gmra.mrb[12].mxu0 %vm751_vm3, %v921_v22 }
 0x3af   : > { %v1151_v24 = vmul.f32 1.442695, %v1150_v23  ;;  %1584 = vmatprep.mubr.msk.bf16.mxu0 %vm2026_vm0, %v2025_v0 }
 0x3b0   : > { %v1042_v25 = vpop.permute.xlu0 %1041 }
 0x3b1   : > { %1737 = vpow2.f32 %v1151_v24  ;;  %v1047_v27 = vsel %vm811_vm4, %v1042_v25, 0  ;;  %805 = vadd.xlane.f32.xlu1 %v804_v26 }
 0x3b2   : > { %1583 = vmatpush3.bf16.msra.mxu0 %v1047_v27 }
 0x3b3   : > { %v1736_v28 = vpop.eup %1735  ;;  %1594 = vmatprep.subr.bf16.mxu0 %v2025_v0 }
 0x3b4   : > { %v1037_v30 = vsel %vm751_vm3, %v1736_v28, 0.0  ;;  %v1040_v31 = vpack.c.bf16 %v1736_v28, %v1736_v28 }
 0x3b5   : > { %1038 = vadd.xlane.f32.xlu0 %v1037_v30 }
 0x3b6   : > { %1585 = vmatmul.mubr.msk.bf16.vlgmr.msra.gmra.mrb[16].mxu0 %vm751_vm3, %v1040_v31 }
 0x3b7   : > { %1595 = vmatpush3.bf16.msra.mxu0 %v1163_v32  ;;  %1596 = vmatprep.mubr.msk.bf16.mxu0 %vm2026_vm0, %v2025_v0 }
 0x3bb   : > { %v1738_v33 = vpop.eup %1737 }
 0x3bc   : > { %v1153_v34 = vsel %vm751_vm3, %v1738_v33, 0.0  ;;  %v1156_v35 = vpack.c.bf16 %v1738_v33, %v1738_v33 }
 0x3bd   : > { %1154 = vadd.xlane.f32.xlu0 %v1153_v34 }
 0x3be   : > { %1597 = vmatmul.mubr.msk.bf16.vlgmr.msra.gmra.mrb[20].mxu0 %vm751_vm3, %v1156_v35 }
 0x40c   : > { %v849_v36 = vpop.f32.mrb[8].mxu0 }
 0x40d   : > { %v1562_v37 = vpop.f32.mrb[9].mxu0 }
 0x40e   : > { %v852_v38 = vpop.f32.mrb[10].mxu0 }
 0x40f   : > { %v1563_v39 = vpop.f32.mrb[11].mxu0 }
 0x43a   : > { %v920_v40 = vpop.xlane.xlu1 %919 }
 0x43e   : > { %v806_v41 = vpop.xlane.xlu1 %805 }
 0x43f   : > { %1739 = vrcp.f32 %v806_v41 }
 0x440   : > { %1741 = vrcp.f32 %v920_v40 }
 0x442   : > { %v1039_v44 = vpop.xlane.xlu0 %1038 }
 0x443   : > { %1743 = vrcp.f32 %v1039_v44 }
 0x449   : > { %v1740_v42 = vpop.eup %1739 }
 0x44a   : > { %v856_v43 = vmul.f32 %v1740_v42, %v849_v36  ;;  %v1742_v45 = vpop.eup %1741  ;;  %v1155_v50 = vpop.xlane.xlu0 %1154 }
 0x44b   : > { %1745 = vrcp.f32 %v1155_v50 }
 0x44c   : > { %857 = vst.msk [vmem:[#allocation4] sm:$0xff] %vm751_vm3, %v856_v43 }
 0x44d   : > { %v1744_v53 = vpop.eup %1743 }
 0x455   : > { %v1746_v60 = vpop.eup %1745 }
 0x481   : > { %v967_v46 = vpop.f32.mrb[12].mxu0 }
 0x482   : > { %v974_v47 = vmul.f32 %v1742_v45, %v967_v46  ;;  %v1574_v48 = vpop.f32.mrb[13].mxu0 }
 0x483   : > { %v970_v49 = vpop.f32.mrb[14].mxu0 }
 0x484   : > { %976 = vrot.lane.b32.xlu0 %v974_v47, %s2030_s26  ;;  %v1575_v51 = vpop.f32.mrb[15].mxu0  ;;  %s2033_s26 = smov [#allocation16]  }
 0x485   : > { %s1925_s15 = sshll.u32 %s2033_s26, 4  ;;  %s1926_s15 = int_to_ptr.vmem [resolvable:$false] %s1925_s15 }
 0x486   : > { %s1927_s1 = scalar_lea.vmem %s1926_s15, 256  ;;  %p1928_p13 = scmp.lt.s32.totalorder %s2489_s11, %s1926_s15 }
 0x487   : > { %p1929_p6 = scmp.lt.s32.totalorder %s1927_s1, %s1921_s9 }
 0x489   : > { %v1083_v54 = vpop.f32.mrb[16].mxu0  ;;  %p1930_p0 = por %p1929_p6, %p1928_p13 }
 0x48a   : > { %v1090_v56 = vmul.f32 %v1744_v53, %v1083_v54  ;;  %v1586_v57 = vpop.f32.mrb[17].mxu0 }
 0x48b   : > { %v1086_v58 = vpop.f32.mrb[18].mxu0  ;;  %p1931_p12 = pnand %p1930_p0, %p1924_p1 }
 0x48c   : > { %1092 = vrot.lane.b32.xlu1 %v1090_v56, %s2031_s24  ;;  %v1587_v59 = vpop.f32.mrb[19].mxu0 }
 0x491   : > { %v1199_v61 = vpop.f32.mrb[20].mxu0 }
 0x492   : > { %v1206_v62 = vmul.f32 %v1746_v60, %v1199_v61  ;;  %v1598_v63 = vpop.f32.mrb[21].mxu0 }
 0x493   : > { %v1202_v1 = vpop.f32.mrb[22].mxu0 }
 0x494   : > { %1208 = vrot.lane.b32.xlu1 %v1206_v62, %s2032_s6  ;;  %v1599_v2 = vpop.f32.mrb[23].mxu0 }
 0x4f6   : > { %v977_v3 = vpop.permute.xlu0 %976 }
 0x4f7   : > { %980 = vst.msk [vmem:[#allocation4] sm:$0xff] %vm979_vm5, %v977_v3 }
 0x4fe   : > { %v1093_v0 = vpop.permute.xlu1 %1092 }
 0x4ff   : > { %1096 = vst.msk [vmem:[#allocation4] sm:$0xff] %vm1095_vm6, %v1093_v0 }
 0x506   : > { %v1209_v4 = vpop.permute.xlu1 %1208 }
 0x507   : > { %1212 = vst.msk [vmem:[#allocation4] sm:$0xff] %vm1211_vm7, %v1209_v4 }
 0x50e   : > { %v1213_v5 = vld [vmem:[#allocation4] sm:$0xff] }
 0x50f   : > { %v1214_v6 = vpack.c.bf16 %v1213_v5, %v1213_v5 }
 0x511   : > { %1605 = vmatmul.mubr.msk.bf16.vlgmr.msra.gmra.mrb[20].mxu1 %vm564_vm1, %v1214_v6 }
 0x5e4   : > { %v1275_v8 = vpop.f32.mrb[20].mxu1 }
 0x5e5   : > { %v1276_v9 = vadd.f32 %v1492_v7, %v1275_v8  ;;  %v1606_v10 = vpop.f32.mrb[21].mxu1 }
 0x5e6   : > { %v1278_v11 = vpop.f32.mrb[22].mxu1 }
 0x5e7   : > { %v1607_v12 = vpop.f32.mrb[23].mxu1  ;;  %1281 = vst.msk [vmem:[%s531_s17] sm:$0xff] %vm564_vm1, %v1276_v9 }
 0x5e8   : > { %1934 = shalt.err (!%p1931_p12)
}
 0x5e9   : > { %s1935_s3 = scalar_lea.hbm %s2487_s22, 128  ;;  %s1939_s14 = scalar_lea.hbm %s2621_s10, 256 }
 0x5ea   : > { %p1936_p8 = scmp.ne.s32.totalorder %s2487_s22, %s1935_s3  ;;  %p1940_p5 = scmp.lt.u32.totalorder %s2487_s22, %s2621_s10 }
 0x5eb   : > { %p1941_p9 = scmp.lt.u32.totalorder %s1939_s14, %s1935_s3  ;;  %p1943_p4 = scmp.lt.u32.totalorder %s1935_s3, %s2487_s22 }
 0x5ec   : > { %p1937_p11 = pnand %p1936_p8, %p2622_p7 }
 0x5ed   : > { %p1942_p2 = por %p1941_p9, %p1940_p5 }
 0x5ee   : > { %p1938_p10 = pneg %p1937_p11 }
 0x5ef   : > { %p1944_p3 = por %p1943_p4, %p1942_p2 }
 0x5f1   : > { %p1945_p1 = pnand %p1944_p3, %p1938_p10 }
 0x5f3   : > { %1948 = shalt.err (!%p1945_p1)
}
 0x5f4   : > { %1626 = dma.vmem_to_hbm [thread:$0]  (%p2622_p7), %s2489_s11, 128, %s2487_s22, %s1283_s29  }
 0x5f5 PF: > { %s2623_s25 = sld [smem:[#allocation22_spill]]  ;;  %s2624_s13 = sld [smem:[#allocation26_spill]] }
 0x5f6   : > { %s2625_s30 = sld [smem:[#allocation25_spill]] }
 0x5fb   : > { %s1309_s23 = sand.u32 1, %s2623_s25   ;;  %p2626_p13 = scmp.ne.s32.totalorder %s2624_s13, 0 }
 0x5fc   : > { %p2627_p6 = scmp.ge.s32.totalorder %s2625_s30, 2  ;;  %s1310_s16 = scalar_lea.sflag [#allocation7], %s1309_s23 }
 0x5fe   : > { %p1649_p0 = pnand %p2627_p6, %p2626_p13 }
 0x600   : > { %1990 = dma.done.wait (!%p1649_p0), %s1310_s16, 128  }
 0x601   : > { %1992 = vsyncadd (!%p1649_p0), %s1310_s16, 4294967168  ;;  %s32_s22 = sadd.s32 1, %s2625_s30   ;;  %s2628_s12 = sld [smem:[#allocation29_spill]] }
 0x602   : > { %p29_p12 = scmp.ge.s32.totalorder %s32_s22, 4   ;;  %s2629_s20 = sld [smem:[#allocation24_spill]] }
 0x603   : > { %s2630_s21 = sld [smem:[#allocation27_spill]]  ;;  %s2631_s17 = smov %s1999_s18 }
 0x604   : > { %s2632_s18 = smov %s2003_s19  ;;  %31 = sbr.rel (!%p29_p12) target bundleno = 18 (0x12), region = 149 }
 0x607   : > { %s2633_s19 = smov %s2628_s12 }
 0x60b   :  { %1315 = vsyncpa [#allocation6], 1 }
 0x60c   :  { %1317 = vsyncpa [#allocation6 + $0x1], 1 }
 0x60d   :  { %1318 = vsyncpa [#allocation9], 1 }
 0x60e   :  { %1320 = vsyncpa [#allocation9 + $0x1], 1 }
 0x60f   :  { %1321 = vsyncpa [#allocation12], 1 }
 0x610   :  { %1322 = vsyncpa [#allocation15], 1 }
 0x611   :  { %1323 = vsyncpa [#allocation7], 1 }
 0x612   :  { %1325 = vsyncpa [#allocation7 + $0x1], 1 }

</bundles_post_ra>
